<compile_context>
chip_gen: v5e
topology: v5e:2x2
jax: 0.10.0
libtpu: 0.0.40
codegen_flags: <defaults>
</compile_context>

<pallas_src>
import jax
import jax.numpy as jnp
from jax import lax
from jax.experimental import pallas as pl
from jax.experimental.pallas import tpu as pltpu


# ----------------------------------------------------------------------------
# model constants (wase.py, BLOCKS == 'tcn')
# ----------------------------------------------------------------------------
REF_ENC_DIM = 128
REF_WIN = 256
REF_STRIDE = 64
ENC_DIM = 512
FEATURE_DIM = 128
WIN = 16
STRIDE = WIN // 2
VOICEPRINT_DIM = 512           # bi-directional hidden 256 * 2 in the reference model

_VMEM_LIMIT = 32 * 1024 * 1024  # explicit scoped-VMEM budget, safe on v5e/v6e/v7x


def _round_up(x, m):
    return (x + m - 1) // m * m


# ----------------------------------------------------------------------------
# Pallas kernels
# ----------------------------------------------------------------------------
def _encoder_pair_kernel(even_ref, odd_ref, w_ref, o_ref):
    """Main encoder (win=16, stride=8): one tile of even/odd frame pairs.

    even/odd: (1, tm, 16) bf16 frame taps, w: (16, 512) bf16,
    o: (1, tm, 1024) f32 — [frame 2k | frame 2k+1] packed on the lane axis so the
    output block is lane-dense and reshapes for free to (2*tm, 512)."""
    w = w_ref[...]
    ev = jnp.dot(even_ref[0], w, preferred_element_type=jnp.float32)   # (tm, 512)
    od = jnp.dot(odd_ref[0], w, preferred_element_type=jnp.float32)    # (tm, 512)
    o_ref[0] = jnp.concatenate([ev, od], axis=-1)                      # (tm, 1024)


def _frame_matmul_kernel(x_ref, w_ref, o_ref):
    """Reference encoder tile: (1, tf, 256) bf16 @ (256, 128) bf16 -> (1, tf, 128) f32."""
    o_ref[0] = jnp.dot(x_ref[0], w_ref[...], preferred_element_type=jnp.float32)


def _pool_linear_kernel(wp_ref, x_ref, wf_ref, b_ref, o_ref):
    """Masked mean-pool (as an MXU batched dot) fused with the folded 128x128 linear.

    wp: (B, 1, Tp) bf16 pooling weights (= mask / len), x: (B, Tp, 128) bf16 features,
    wf: (128, 128) bf16 = W_vp_proj @ W_lin (folded offline), b: (1, 128) f32."""
    pooled = lax.dot_general(
        wp_ref[...], x_ref[...],
        dimension_numbers=(((2,), (1,)), ((0,), (0,))),
        preferred_element_type=jnp.float32)               # (B, 1, 128)
    pooled = pooled[:, 0, :].astype(jnp.bfloat16)          # (B, 128)
    o_ref[...] = jnp.dot(pooled, wf_ref[...],
                         preferred_element_type=jnp.float32) + b_ref[...]


# ----------------------------------------------------------------------------
# Wrappers (pallas_call sites) + padding glue
# ----------------------------------------------------------------------------
def pad_signal(x, win, stride):
    """wase.pad_signal for 2-D (B, L) input.  Returns (padded, rest)."""
    B, L = x.shape
    rest = win - (stride + L % win) % win
    if rest > 0:
        x = jnp.concatenate([x, jnp.zeros((B, rest), x.dtype)], axis=1)
    aux = jnp.zeros((B, stride), x.dtype)
    x = jnp.concatenate([aux, x, aux], axis=1)
    return x, rest


def mix_conv_encoder(padded, w_enc_bf16, *, tm=512):
    """Conv1d(1, 512, 16, stride=8, bias=False) on the padded mixture, channel-last.

    No im2col gather is materialised: even frames (starts 0, 16, 32, ...) are a free
    reshape of the padded waveform, odd frames one contiguous shifted view."""
    B, Lp = padded.shape
    m = Lp // WIN                       # number of even/odd frame pairs; F = 2*m
    assert Lp == m * WIN + STRIDE, "pad_signal guarantees Lp == m*win + stride"
    x16 = padded.astype(jnp.bfloat16)
    even = x16[:, :m * WIN].reshape(B, m, WIN)                    # frames 0, 2, 4, ...
    odd = x16[:, STRIDE:STRIDE + m * WIN].reshape(B, m, WIN)      # frames 1, 3, 5, ...
    tm = min(tm, _round_up(m, 16))
    grid = (B, pl.cdiv(m, tm))
    out = pl.pallas_call(
        _encoder_pair_kernel,
        out_shape=jax.ShapeDtypeStruct((B, m, 2 * ENC_DIM), jnp.float32),
        grid=grid,
        in_specs=[pl.BlockSpec((1, tm, WIN), lambda b, i: (b, i, 0)),
                  pl.BlockSpec((1, tm, WIN), lambda b, i: (b, i, 0)),
                  pl.BlockSpec((WIN, ENC_DIM), lambda b, i: (0, 0))],
        out_specs=pl.BlockSpec((1, tm, 2 * ENC_DIM), lambda b, i: (b, i, 0)),
        compiler_params=pltpu.CompilerParams(
            dimension_semantics=("parallel", "parallel"),
            vmem_limit_bytes=_VMEM_LIMIT),
    )(even, odd, w_enc_bf16)
    return out.reshape(B, 2 * m, ENC_DIM)        # (B, F, 512)


def ref_conv_encoder(ref_padded, w_ref_enc_bf16, *, tf=256):
    """Conv1d(1, 128, 256, stride=64, bias=False) on the padded reference, channel-last.

    Frames are built from 4 shifted chunk views (cheap contiguous slices of the tiny
    reference waveform, no index gather), zero-padded to a multiple of 16 frames so
    MXU tiles and stores are unmasked; the pooling mask ignores padded frames."""
    B, Lp = ref_padded.shape
    r = REF_WIN // REF_STRIDE                     # 4 shifts
    NC = Lp // REF_STRIDE
    F = NC - r + 1                                # == (Lp - win)//stride + 1
    chunks = ref_padded.astype(jnp.bfloat16).reshape(B, NC, REF_STRIDE)
    frames = jnp.concatenate([chunks[:, j:j + F, :] for j in range(r)], axis=-1)  # (B,F,256)
    Tp = _round_up(F, 16)
    if Tp != F:
        frames = jnp.concatenate(
            [frames, jnp.zeros((B, Tp - F, REF_WIN), frames.dtype)], axis=1)
    tf = min(tf, Tp)
    grid = (B, pl.cdiv(Tp, tf))
    ref_feas = pl.pallas_call(
        _frame_matmul_kernel,
        out_shape=jax.ShapeDtypeStruct((B, Tp, REF_ENC_DIM), jnp.float32),
        grid=grid,
        in_specs=[pl.BlockSpec((1, tf, REF_WIN), lambda b, i: (b, i, 0)),
                  pl.BlockSpec((REF_WIN, REF_ENC_DIM), lambda b, i: (0, 0))],
        out_specs=pl.BlockSpec((1, tf, REF_ENC_DIM), lambda b, i: (b, i, 0)),
        compiler_params=pltpu.CompilerParams(
            dimension_semantics=("parallel", "parallel"),
            vmem_limit_bytes=_VMEM_LIMIT),
    )(frames, w_ref_enc_bf16)
    return ref_feas               # (B, Tp, 128); rows >= F are zeros


def pool_linear_voiceprint(ref_feas, ref_feas_len, w_fused_bf16, b_lin_f32):
    """voiceprint = masked_mean(ref_feas) @ (W_vp_proj @ W_lin) + b, fused in one kernel."""
    B, Tp, D = ref_feas.shape
    Fdim = w_fused_bf16.shape[1]
    lens = jnp.maximum(ref_feas_len.astype(jnp.float32), 1e-6)          # div-by-zero guard
    t_idx = jnp.arange(Tp, dtype=jnp.float32)[None, :]
    w_pool = jnp.where(t_idx < lens[:, None], 1.0 / lens[:, None], 0.0)  # (B, Tp) tiny prepass
    w_pool = w_pool.astype(jnp.bfloat16)[:, None, :]                     # (B, 1, Tp)
    bias = b_lin_f32.reshape(1, Fdim)
    # TODO(synk): at production T_ref (real LSTM output) tile Tp into the grid with an
    # accumulator scratch (pl.when init/finalize) instead of one resident (B, Tp, D) block.
    return pl.pallas_call(
        _pool_linear_kernel,
        out_shape=jax.ShapeDtypeStruct((B, Fdim), jnp.float32),
        grid=(1,),
        in_specs=[pl.BlockSpec((B, 1, Tp), lambda i: (0, 0, 0)),
                  pl.BlockSpec((B, Tp, D), lambda i: (0, 0, 0)),
                  pl.BlockSpec((D, Fdim), lambda i: (0, 0)),
                  pl.BlockSpec((1, Fdim), lambda i: (0, 0))],
        out_specs=pl.BlockSpec((B, Fdim), lambda i: (0, 0)),
        compiler_params=pltpu.CompilerParams(
            dimension_semantics=("arbitrary",),
            vmem_limit_bytes=_VMEM_LIMIT),
    )(w_pool, ref_feas.astype(jnp.bfloat16), w_fused_bf16, bias)


# ----------------------------------------------------------------------------
# Parameters
# ----------------------------------------------------------------------------
def init_params(key):
    k0, k1, k2, k3, k4 = jax.random.split(key, 5)
    return {
        # ref_encoder: Conv1d(1, 128, 256, stride=64, bias=False) — stored as W^T (K, Cout)
        "w_ref_enc": 0.02 * jax.random.normal(k0, (REF_WIN, REF_ENC_DIM), jnp.float32),
        # encoder: Conv1d(1, 512, 16, stride=8, bias=False) — stored as W^T (K, Cout)
        "w_enc": 0.02 * jax.random.normal(k1, (WIN, ENC_DIM), jnp.float32),
        # stand-in projection for the external voiceprint_encoder (128 -> 512)
        "w_vp_proj": 0.02 * jax.random.normal(k2, (REF_ENC_DIM, VOICEPRINT_DIM), jnp.float32),
        # linear: nn.Linear(512, 128)
        "w_lin": 0.02 * jax.random.normal(k3, (VOICEPRINT_DIM, FEATURE_DIM), jnp.float32),
        "b_lin": 0.01 * jax.random.normal(k4, (FEATURE_DIM,), jnp.float32),
    }


def fold_params(params):
    """Offline weight prep: bf16 MXU operands + algebraic fold of the reference head.

    The masked mean-pool is linear, so it commutes with the (linear) voiceprint
    stand-in; W_vp_proj @ W_lin collapses into one 128x128 matrix (valid only while
    the LSTM stand-in is linear — see TODO in wase_forward)."""
    return {
        "w_ref_enc": params["w_ref_enc"].astype(jnp.bfloat16),
        "w_enc": params["w_enc"].astype(jnp.bfloat16),
        "w_fused": (params["w_vp_proj"] @ params["w_lin"]).astype(jnp.bfloat16),
        "b_lin": params["b_lin"].astype(jnp.float32),
    }


# ----------------------------------------------------------------------------
# wase forward (cues / BLOCKS == 'tcn' path, as far as wase.py itself defines)
# ----------------------------------------------------------------------------
def wase_forward(folded, mix_wav, ref_wav, ref_wav_len, oracle_wav_endpoint):
    # ---- encode_reference --------------------------------------------------
    ref_padded, ref_rest = pad_signal(ref_wav, REF_WIN, REF_STRIDE)
    ref_feas = ref_conv_encoder(ref_padded, folded["w_ref_enc"])          # (B, Tp, 128)
    ref_feas_len = (ref_wav_len.astype(jnp.float32) + ref_rest - REF_WIN) / REF_STRIDE + 1.0

    # ---- get_voiceprint ----------------------------------------------------
    # TODO(synk): models.rnn_encoder (2-layer bidirectional LSTM, hidden=256) is an
    # external module; its linear stand-in (128->512) has been folded together with the
    # masked mean-pool and nn.Linear(512, 128) into a single 128x128 matmul (valid only
    # while the stand-in is linear; sort/unsort by length cancels for mean pooling).
    voiceprint = pool_linear_voiceprint(ref_feas, ref_feas_len,
                                        folded["w_fused"], folded["b_lin"])  # (B, 128)

    # ---- encode_noisy ------------------------------------------------------
    mix_padded, rest = pad_signal(mix_wav, WIN, STRIDE)
    enc_output = mix_conv_encoder(mix_padded, folded["w_enc"])            # (B, F, 512)

    ep_padded, _ = pad_signal(oracle_wav_endpoint, WIN, STRIDE)
    oracle_feat_endpoint = ep_padded[:, :-STRIDE][:, ::STRIDE]            # (B, F)

    # TODO(synk): models.TasNet TCN separator (ss_model) and its endpoint heads are
    # external modules and are not translated; forward stops at enc_output.
    return voiceprint, enc_output, oracle_feat_endpoint, rest


# ----------------------------------------------------------------------------
# Harness
# ----------------------------------------------------------------------------
if __name__ == "__main__":
    key = jax.random.PRNGKey(0)
    kp, k_mix, k_ref, k_ep = jax.random.split(key, 4)

    params = init_params(kp)
    folded = fold_params(params)

    B = 2
    MIX_LEN = 1000      # -> 128 encoder frames after padding
    REF_LEN = 1024      # -> 18 reference frames after padding

    mix_wav = jax.random.normal(k_mix, (B, MIX_LEN), jnp.float32)
    ref_wav = jax.random.normal(k_ref, (B, REF_LEN), jnp.float32)
    ref_wav_len = jnp.array([1024.0, 832.0], jnp.float32)
    oracle_wav_endpoint = (jax.random.uniform(k_ep, (B, MIX_LEN)) > 0.5).astype(jnp.float32)

    fwd = jax.jit(wase_forward)
    voiceprint, enc_output, oracle_feat_endpoint, rest = jax.block_until_ready(
        fwd(folded, mix_wav, ref_wav, ref_wav_len, oracle_wav_endpoint))

    assert voiceprint.shape == (B, FEATURE_DIM)
    assert enc_output.shape == (B, 128, ENC_DIM)
    assert oracle_feat_endpoint.shape == (B, 128)

    # ---- lightweight numeric check against a pure-JAX f32 reference (bf16 tolerances) --
    mix_padded, _ = pad_signal(mix_wav, WIN, STRIDE)
    Fm = (mix_padded.shape[1] - WIN) // STRIDE + 1
    midx = STRIDE * jnp.arange(Fm)[:, None] + jnp.arange(WIN)[None, :]
    enc_ref = jnp.einsum('bfk,kc->bfc', mix_padded[:, midx], params["w_enc"])
    assert float(jnp.max(jnp.abs(enc_ref - enc_output))) < 3e-2

    ref_padded, ref_rest = pad_signal(ref_wav, REF_WIN, REF_STRIDE)
    Fr = (ref_padded.shape[1] - REF_WIN) // REF_STRIDE + 1
    ridx = REF_STRIDE * jnp.arange(Fr)[:, None] + jnp.arange(REF_WIN)[None, :]
    ref_feas_ref = jnp.einsum('bfk,kc->bfc', ref_padded[:, ridx], params["w_ref_enc"])
    lens = (ref_wav_len + ref_rest - REF_WIN) / REF_STRIDE + 1.0
    mask = (jnp.arange(Fr)[None, :] < lens[:, None]).astype(jnp.float32)
    pooled = jnp.einsum('bf,bfd->bd', mask, ref_feas_ref) / lens[:, None]
    vp_ref = (pooled @ params["w_vp_proj"]) @ params["w_lin"] + params["b_lin"]
    assert float(jnp.max(jnp.abs(vp_ref - voiceprint))) < 1e-2

    print("KERNEL_OK")
</pallas_src>

<mosaic_0001>
module attributes {stable_mosaic.version = 11 : i64} {
  func.func @_pool_linear_kernel(%arg0: i32, %arg1: memref<2x1x32xbf16, #tpu.memory_space<vmem>>, %arg2: memref<2x32x128xbf16, #tpu.memory_space<vmem>>, %arg3: memref<128x128xbf16, #tpu.memory_space<vmem>>, %arg4: memref<1x128xf32, #tpu.memory_space<vmem>>, %arg5: memref<2x128xf32, #tpu.memory_space<vmem>>) attributes {dimension_semantics = [#tpu.dimension_semantics<arbitrary>], iteration_bounds = array<i64: 1>, scalar_prefetch = 0 : i64, scratch_operands = 0 : i64, tpu.core_type = #tpu.core_type<tc>, window_params = [{pipeline_mode = #tpu.pipeline_mode<synchronous>, transform_indices = @transform_0, window_bounds = array<i64: 2, 1, 32>}, {pipeline_mode = #tpu.pipeline_mode<synchronous>, transform_indices = @transform_1, window_bounds = array<i64: 2, 32, 128>}, {pipeline_mode = #tpu.pipeline_mode<synchronous>, transform_indices = @transform_2, window_bounds = array<i64: 128, 128>}, {pipeline_mode = #tpu.pipeline_mode<synchronous>, transform_indices = @transform_3, window_bounds = array<i64: 1, 128>}, {pipeline_mode = #tpu.pipeline_mode<synchronous>, transform_indices = @transform_4, window_bounds = array<i64: 2, 128>}]} {
    %c0 = arith.constant 0 : index
    %c0_0 = arith.constant 0 : index
    %c0_1 = arith.constant 0 : index
    %0 = vector.load %arg1[%c0, %c0_0, %c0_1] : memref<2x1x32xbf16, #tpu.memory_space<vmem>>, vector<2x1x32xbf16>
    %c0_2 = arith.constant 0 : index
    %c0_3 = arith.constant 0 : index
    %c0_4 = arith.constant 0 : index
    %1 = vector.load %arg2[%c0_2, %c0_3, %c0_4] : memref<2x32x128xbf16, #tpu.memory_space<vmem>>, vector<2x32x128xbf16>
    %cst = arith.constant dense<0.000000e+00> : vector<2x1x128xf32>
    %2 = tpu.matmul %0, %1, %cst {dimension_numbers = #tpu.dot_dimension_numbers<[2], [1], [1], [2], [0, 0, 0, 1, 1, 2], [0], [0]>} : vector<2x1x32xbf16>, vector<2x32x128xbf16>, vector<2x1x128xf32> -> vector<2x1x128xf32>
    %3 = vector.shape_cast %2 : vector<2x1x128xf32> to vector<2x128xf32>
    %4 = arith.truncf %3 : vector<2x128xf32> to vector<2x128xbf16>
    %c0_5 = arith.constant 0 : index
    %c0_6 = arith.constant 0 : index
    %5 = vector.load %arg3[%c0_5, %c0_6] : memref<128x128xbf16, #tpu.memory_space<vmem>>, vector<128x128xbf16>
    %cst_7 = arith.constant dense<0.000000e+00> : vector<2x128xf32>
    %6 = tpu.matmul %4, %5, %cst_7 {dimension_numbers = #tpu.dot_dimension_numbers<[1], [0], [0], [1], [0, 0, 1, 1], [], []>} : vector<2x128xbf16>, vector<128x128xbf16>, vector<2x128xf32> -> vector<2x128xf32>
    %c0_8 = arith.constant 0 : index
    %c0_9 = arith.constant 0 : index
    %7 = vector.load %arg4[%c0_8, %c0_9] : memref<1x128xf32, #tpu.memory_space<vmem>>, vector<1x128xf32>
    %8 = vector.broadcast %7 : vector<1x128xf32> to vector<2x128xf32>
    %9 = arith.addf %6, %8 : vector<2x128xf32>
    %c0_10 = arith.constant 0 : index
    %c0_11 = arith.constant 0 : index
    %10 = vector.load %arg5[%c0_10, %c0_11] : memref<2x128xf32, #tpu.memory_space<vmem>>, vector<2x128xf32>
    tpu.vector_store %arg5[%c0_10, %c0_11], %9 {strides = array<i32>} : memref<2x128xf32, #tpu.memory_space<vmem>>, vector<2x128xf32>,
    return
  }
  func.func @transform_0(%arg0: i32) -> (i32, i32, i32) {
    %c0_i32 = arith.constant 0 : i32
    %c0_i32_0 = arith.constant 0 : i32
    %c0_i32_1 = arith.constant 0 : i32
    %c0_i32_2 = arith.constant 0 : i32
    return %c0_i32, %c0_i32_0, %c0_i32_1 : i32, i32, i32
  }
  func.func @transform_1(%arg0: i32) -> (i32, i32, i32) {
    %c0_i32 = arith.constant 0 : i32
    %c0_i32_0 = arith.constant 0 : i32
    %c0_i32_1 = arith.constant 0 : i32
    %c0_i32_2 = arith.constant 0 : i32
    return %c0_i32, %c0_i32_0, %c0_i32_1 : i32, i32, i32
  }
  func.func @transform_2(%arg0: i32) -> (i32, i32) {
    %c0_i32 = arith.constant 0 : i32
    %c0_i32_0 = arith.constant 0 : i32
    %c0_i32_1 = arith.constant 0 : i32
    return %c0_i32, %c0_i32_0 : i32, i32
  }
  func.func @transform_3(%arg0: i32) -> (i32, i32) {
    %c0_i32 = arith.constant 0 : i32
    %c0_i32_0 = arith.constant 0 : i32
    %c0_i32_1 = arith.constant 0 : i32
    return %c0_i32, %c0_i32_0 : i32, i32
  }
  func.func @transform_4(%arg0: i32) -> (i32, i32) {
    %c0_i32 = arith.constant 0 : i32
    %c0_i32_0 = arith.constant 0 : i32
    %c0_i32_1 = arith.constant 0 : i32
    return %c0_i32, %c0_i32_0 : i32, i32
  }
}

module attributes {stable_mosaic.version = 11 : i64} {
  func.func @_frame_matmul_kernel(%arg0: i32, %arg1: i32, %arg2: memref<1x32x256xbf16, #tpu.memory_space<vmem>>, %arg3: memref<256x128xbf16, #tpu.memory_space<vmem>>, %arg4: memref<1x32x128xf32, #tpu.memory_space<vmem>>) attributes {dimension_semantics = [#tpu.dimension_semantics<parallel>, #tpu.dimension_semantics<parallel>], iteration_bounds = array<i64: 2, 1>, scalar_prefetch = 0 : i64, scratch_operands = 0 : i64, tpu.core_type = #tpu.core_type<tc>, window_params = [{transform_indices = @transform_0, window_bounds = array<i64: 1, 32, 256>}, {pipeline_mode = #tpu.pipeline_mode<synchronous>, transform_indices = @transform_1, window_bounds = array<i64: 256, 128>}, {transform_indices = @transform_2, window_bounds = array<i64: 1, 32, 128>}]} {
    %c0 = arith.constant 0 : index
    %c0_0 = arith.constant 0 : index
    %c0_1 = arith.constant 0 : index
    %0 = vector.load %arg2[%c0, %c0_0, %c0_1] : memref<1x32x256xbf16, #tpu.memory_space<vmem>>, vector<1x32x256xbf16>
    %1 = vector.shape_cast %0 : vector<1x32x256xbf16> to vector<32x256xbf16>
    %c0_2 = arith.constant 0 : index
    %c0_3 = arith.constant 0 : index
    %2 = vector.load %arg3[%c0_2, %c0_3] : memref<256x128xbf16, #tpu.memory_space<vmem>>, vector<256x128xbf16>
    %cst = arith.constant dense<0.000000e+00> : vector<32x128xf32>
    %3 = tpu.matmul %1, %2, %cst {dimension_numbers = #tpu.dot_dimension_numbers<[1], [0], [0], [1], [0, 0, 1, 1], [], []>} : vector<32x256xbf16>, vector<256x128xbf16>, vector<32x128xf32> -> vector<32x128xf32>
    %c0_4 = arith.constant 0 : index
    %c0_5 = arith.constant 0 : index
    %c0_6 = arith.constant 0 : index
    %4 = vector.load %arg4[%c0_4, %c0_5, %c0_6] : memref<1x32x128xf32, #tpu.memory_space<vmem>>, vector<1x32x128xf32>
    %5 = vector.shape_cast %4 : vector<1x32x128xf32> to vector<32x128xf32>
    %6 = vector.shape_cast %3 : vector<32x128xf32> to vector<1x32x128xf32>
    tpu.vector_store %arg4[%c0_4, %c0_5, %c0_6], %6 {strides = array<i32>} : memref<1x32x128xf32, #tpu.memory_space<vmem>>, vector<1x32x128xf32>,
    return
  }
  func.func @transform_0(%arg0: i32, %arg1: i32) -> (i32, i32, i32) {
    %c0_i32 = arith.constant 0 : i32
    %c0_i32_0 = arith.constant 0 : i32
    return %arg0, %arg1, %c0_i32 : i32, i32, i32
  }
  func.func @transform_1(%arg0: i32, %arg1: i32) -> (i32, i32) {
    %c0_i32 = arith.constant 0 : i32
    %c0_i32_0 = arith.constant 0 : i32
    %c0_i32_1 = arith.constant 0 : i32
    return %c0_i32, %c0_i32_0 : i32, i32
  }
  func.func @transform_2(%arg0: i32, %arg1: i32) -> (i32, i32, i32) {
    %c0_i32 = arith.constant 0 : i32
    %c0_i32_0 = arith.constant 0 : i32
    return %arg0, %arg1, %c0_i32 : i32, i32, i32
  }
}

module attributes {stable_mosaic.version = 11 : i64} {
  func.func @_encoder_pair_kernel(%arg0: i32, %arg1: i32, %arg2: memref<1x64x16xbf16, #tpu.memory_space<vmem>>, %arg3: memref<1x64x16xbf16, #tpu.memory_space<vmem>>, %arg4: memref<16x512xbf16, #tpu.memory_space<vmem>>, %arg5: memref<1x64x1024xf32, #tpu.memory_space<vmem>>) attributes {dimension_semantics = [#tpu.dimension_semantics<parallel>, #tpu.dimension_semantics<parallel>], iteration_bounds = array<i64: 2, 1>, scalar_prefetch = 0 : i64, scratch_operands = 0 : i64, tpu.core_type = #tpu.core_type<tc>, window_params = [{transform_indices = @transform_0, window_bounds = array<i64: 1, 64, 16>}, {transform_indices = @transform_1, window_bounds = array<i64: 1, 64, 16>}, {pipeline_mode = #tpu.pipeline_mode<synchronous>, transform_indices = @transform_2, window_bounds = array<i64: 16, 512>}, {transform_indices = @transform_3, window_bounds = array<i64: 1, 64, 1024>}]} {
    %c0 = arith.constant 0 : index
    %c0_0 = arith.constant 0 : index
    %0 = vector.load %arg4[%c0, %c0_0] : memref<16x512xbf16, #tpu.memory_space<vmem>>, vector<16x512xbf16>
    %c0_1 = arith.constant 0 : index
    %c0_2 = arith.constant 0 : index
    %c0_3 = arith.constant 0 : index
    %1 = vector.load %arg2[%c0_1, %c0_2, %c0_3] : memref<1x64x16xbf16, #tpu.memory_space<vmem>>, vector<1x64x16xbf16>
    %2 = vector.shape_cast %1 : vector<1x64x16xbf16> to vector<64x16xbf16>
    %cst = arith.constant dense<0.000000e+00> : vector<64x512xf32>
    %3 = tpu.matmul %2, %0, %cst {dimension_numbers = #tpu.dot_dimension_numbers<[1], [0], [0], [1], [0, 0, 1, 1], [], []>} : vector<64x16xbf16>, vector<16x512xbf16>, vector<64x512xf32> -> vector<64x512xf32>
    %c0_4 = arith.constant 0 : index
    %c0_5 = arith.constant 0 : index
    %c0_6 = arith.constant 0 : index
    %4 = vector.load %arg3[%c0_4, %c0_5, %c0_6] : memref<1x64x16xbf16, #tpu.memory_space<vmem>>, vector<1x64x16xbf16>
    %5 = vector.shape_cast %4 : vector<1x64x16xbf16> to vector<64x16xbf16>
    %cst_7 = arith.constant dense<0.000000e+00> : vector<64x512xf32>
    %6 = tpu.matmul %5, %0, %cst_7 {dimension_numbers = #tpu.dot_dimension_numbers<[1], [0], [0], [1], [0, 0, 1, 1], [], []>} : vector<64x16xbf16>, vector<16x512xbf16>, vector<64x512xf32> -> vector<64x512xf32>
    %7 = tpu.concatenate %3, %6 in 1 : vector<64x512xf32>, vector<64x512xf32> -> vector<64x1024xf32>
    %c0_8 = arith.constant 0 : index
    %c0_9 = arith.constant 0 : index
    %c0_10 = arith.constant 0 : index
    %8 = vector.load %arg5[%c0_8, %c0_9, %c0_10] : memref<1x64x1024xf32, #tpu.memory_space<vmem>>, vector<1x64x1024xf32>
    %9 = vector.shape_cast %8 : vector<1x64x1024xf32> to vector<64x1024xf32>
    %10 = vector.shape_cast %7 : vector<64x1024xf32> to vector<1x64x1024xf32>
    tpu.vector_store %arg5[%c0_8, %c0_9, %c0_10], %10 {strides = array<i32>} : memref<1x64x1024xf32, #tpu.memory_space<vmem>>, vector<1x64x1024xf32>,
    return
  }
  func.func @transform_0(%arg0: i32, %arg1: i32) -> (i32, i32, i32) {
    %c0_i32 = arith.constant 0 : i32
    %c0_i32_0 = arith.constant 0 : i32
    return %arg0, %arg1, %c0_i32 : i32, i32, i32
  }
  func.func @transform_1(%arg0: i32, %arg1: i32) -> (i32, i32, i32) {
    %c0_i32 = arith.constant 0 : i32
    %c0_i32_0 = arith.constant 0 : i32
    return %arg0, %arg1, %c0_i32 : i32, i32, i32
  }
  func.func @transform_2(%arg0: i32, %arg1: i32) -> (i32, i32) {
    %c0_i32 = arith.constant 0 : i32
    %c0_i32_0 = arith.constant 0 : i32
    %c0_i32_1 = arith.constant 0 : i32
    return %c0_i32, %c0_i32_0 : i32, i32
  }
  func.func @transform_3(%arg0: i32, %arg1: i32) -> (i32, i32, i32) {
    %c0_i32 = arith.constant 0 : i32
    %c0_i32_0 = arith.constant 0 : i32
    return %arg0, %arg1, %c0_i32 : i32, i32, i32
  }
}

</mosaic_0001>

<bundles_post_ra>
// kernel: wase_forward.4
= control target key start
LH: loop header
LB: loop body
LE: loop exit
PB: predicated region body
PF: predicated region fallthrough
CT: control target
= control target key end

     0   :  { %s359_s0 = inlined_call_operand.vmem [shape: bf16[2,1,32], index: 0, kind: input, shape index: {}]   ;;  %s360_s1 = inlined_call_operand.vmem [shape: bf16[2,32,128], index: 1, kind: input, shape index: {}]   ;;  %s361_s2 = inlined_call_operand.vmem [shape: bf16[128,128], index: 2, kind: input, shape index: {}]   ;;  %s362_s3 = inlined_call_operand.vmem [shape: f32[1,128], index: 3, kind: input, shape index: {}]   ;;  %s363_s4 = inlined_call_operand.hbm [shape: f32[2,128], index: 4, kind: output, shape index: {}]  }
   0x1   :  { %v246_v0 = vld [vmem:[%s360_s1 + $0x8] sm:$0xff]  ;;  %v248_v1 = vld [vmem:[%s360_s1 + $0x18] sm:$0xff]  ;;  %v245_v2 = vld [vmem:[%s360_s1] sm:$0xff] }
   0x2   :  { %51 = vmatpush.bf16.msra.mxu0 %v246_v0  ;;  %79 = vmatpush.bf16.msra.mxu1 %v248_v1  ;;  %v247_v3 = vld [vmem:[%s360_s1 + $0x10] sm:$0xff]  ;;  %v256_v4 = vld [vmem:[%s361_s2 + $0x38] sm:$0xff] }
   0x3   :  { %165 = vmatpush.bf16.msra.mxu2 %v256_v4  ;;  %v255_v5 = vld [vmem:[%s361_s2 + $0x30] sm:$0xff] }
   0x4   :  { %9 = vsyncpa [#allocation3], 0  ;;  %v19_v6 = vld [vmem:[%s359_s0] sm:$0x1]  ;;  %vm41_vm0 = vcmask 261120   ;;  %v254_v8 = vld [vmem:[%s361_s2 + $0x28] sm:$0xff] }
   0x5   :  { %v20_v7 = vld [vmem:[%s359_s0 + $0x1] sm:$0x1]  ;;  %v252_v10 = vld [vmem:[%s361_s2 + $0x18] sm:$0xff]  ;;  %v251_v11 = vld [vmem:[%s361_s2 + $0x10] sm:$0xff]  ;;  %vm113_vm1 = vcmask 1041409   ;;  %s285_s17 = smov [#allocation2]  }
   0x6   :  { %52 = vmatpush.bf16.msra.mxu0 %v245_v2  ;;  %80 = vmatpush.bf16.msra.mxu1 %v247_v3  ;;  %v253_v9 = vld [vmem:[%s361_s2 + $0x20] sm:$0xff]  ;;  %v250_v12 = vld [vmem:[%s361_s2 + $0x8] sm:$0xff]  ;;  %s186_s20 = sshll.u32 %s363_s4, 4  ;;  %s187_s20 = int_to_ptr.hbm [resolvable:$true] %s186_s20 }
   0x7   :  { %166 = vmatpush.bf16.msra.mxu2 %v255_v5  ;;  %v249_v13 = vld [vmem:[%s361_s2] sm:$0xff]  ;;  %s184_s2 = sshll.u32 %s285_s17, 4  ;;  %s185_s2 = int_to_ptr.vmem [resolvable:$true] %s184_s2 }
   0x8   :  { %v258_v25 = vld [vmem:[%s362_s3] ss:$0 sm:$0xff] }
   0x9   :  { %203 = vmatmul.msk.bf16.vlgmr.msra.gmra.mxu0 %vm41_vm0, %v19_v6  ;;  %212 = vmatmul.msk.bf16.vlgmr.msra.gmra.mxu1 %vm41_vm0, %v20_v7 }
   0xb   :  { %167 = vmatpush.bf16.msra.mxu2 %v254_v8 }
   0xf   :  { %168 = vmatpush.bf16.msra.mxu2 %v253_v9 }
  0x13   :  { %169 = vmatpush.bf16.msra.mxu2 %v252_v10 }
  0x17   :  { %170 = vmatpush.bf16.msra.mxu2 %v251_v11 }
  0x1b   :  { %171 = vmatpush.bf16.msra.mxu2 %v250_v12 }
  0x1f   :  { %172 = vmatpush.bf16.msra.mxu2 %v249_v13 }
  0x86   :  { %v54_v14 = vpop.f32.mrf.mxu0  ;;  %v82_v15 = vpop.f32.mrf.mxu1 }
  0x87   :  { %v86_v16 = vpack.c.bf16 %v54_v14, %v54_v14  ;;  %v87_v17 = vpack.c.bf16 %v82_v15, %v82_v15 }
  0x89   :  { %v110_v18 = vunpack.c.l.b16 %v86_v16  ;;  %v111_v19 = vunpack.c.l.b16 %v87_v17 }
  0x8b   :  { %v112_v20 = vrot.slane %v111_v19, 7 }
  0x8d   :  { %v114_v21 = vsel %vm113_vm1, %v112_v20, %v110_v18 }
  0x8e   :  { %v56_v22 = vpop.f32.mrf.mxu0  ;;  %v84_v23 = vpop.f32.mrf.mxu1  ;;  %v115_v24 = vpack.c.b16 %v114_v21, %v114_v21 }
  0x90   :  { %173 = vmatmul.bf16.vlgmr.msra.gmra.mxu2 %v115_v24 }
 0x113   :  { %v174_v26 = vpop.f32.mrf.mxu2 }
 0x114   :  { %v175_v27 = vadd.f32 %v258_v25, %v174_v26 }
 0x116   :  { %178 = vst [vmem:[#allocation2] sm:$0x3] %v175_v27 }
 0x117   :  { %189 = dma.vmem_to_hbm [thread:$0]  %s185_s2, 32, %s187_s20, [#allocation3]  }
 0x11b   :  { %v176_v28 = vpop.f32.mrf.mxu2 }
 0x11c   :  { %283 = dma.done.wait [#allocation3], 32  }
 0x11d   :  { %284 = vsyncadd [#allocation3], 4294967264 }
 0x11e   :  { %194 = vsyncpa [#allocation3], 1 }

// kernel: wase_forward.5
= control target key start
LH: loop header
LB: loop body
LE: loop exit
PB: predicated region body
PF: predicated region fallthrough
CT: control target
= control target key end

     0   :  { %s937_s12 = smov 0   ;;  %s939_s13 = smov 0   ;;  %s1099_s0 = inlined_call_operand.vmem [shape: bf16[2,64,16], index: 0, kind: input, shape index: {}]   ;;  %s1100_s1 = inlined_call_operand.vmem [shape: bf16[2,64,16], index: 1, kind: input, shape index: {}]   ;;  %s1101_s2 = inlined_call_operand.vmem [shape: bf16[16,512], index: 2, kind: input, shape index: {}]   ;;  %s1102_s3 = inlined_call_operand.vmem [shape: f32[2,64,1024], index: 3, kind: output, shape index: {}]  }
   0x1   :  { %s941_s14 = smov 0  }
   0x2 LB: > { %s25_s15 = sadd.s32 1, %s911_s13  ;;  %p765_p0 = scmp.ge.s32.totalorder %s915_s14, 1  ;;  %s915_s14 = sphi %s941_s14, %s13_s14   ;;  %s911_s13 = sphi %s939_s13, %s1104_s13   ;;  %s907_s12 = sphi %s937_s12, %s1103_s12  }
   0x3   : > { %p27_p1 = scmp.ge.s32.totalorder %s25_s15, 2  ;;  %p175_p2 = scmp.lt.s32.totalorder %s915_s14, 3 }
   0x5   : > { %s1106_s15 = smov (%p27_p1, %s25_s15), 0  ;;  %p176_p3 = pnand %p765_p0, %p175_p2 }
   0x6   : > { %p218_p4 = scmp.lt.s32.totalorder (!%p176_p3), %s907_s12, 1 }
   0x7   : > { %179 = sbr.rel (%p176_p3) target bundleno = 275 (0x113), region = 32 }
   0xc   : > { %v790_v0 = vld [vmem:[%s1101_s2] sm:$0xf]  ;;  %v859_v1 = vld [vmem:[%s1101_s2 + $0xc] sm:$0xf0]  ;;  %v857_v2 = vld [vmem:[%s1101_s2 + $0x4] sm:$0xf] }
   0xd   : > { %v791_v3 = vor.u32 %v859_v1, %v790_v0  ;;  %v792_v4 = vld [vmem:[%s1101_s2 + $0x10] sm:$0xf0]  ;;  %v798_v5 = vld [vmem:[%s1101_s2 + $0x8] sm:$0xf]  ;;  %v860_v6 = vld [vmem:[%s1101_s2 + $0x14] sm:$0xf0] }
   0xe   : > { %v795_v7 = vor.u32 %v857_v2, %v792_v4  ;;  %v799_v8 = vor.u32 %v860_v6, %v798_v5  ;;  %v858_v9 = vld [vmem:[%s1101_s2 + $0xc] sm:$0xf]  ;;  %v800_v10 = vld [vmem:[%s1101_s2 + $0x18] sm:$0xf0]  ;;  %s1108_s12 = smov (!%p218_p4, %s907_s12), 1  ;;  %vm301_vm0 = vcmask 130048  }
   0xf   : > { %321 = vmatpush.bf16.msra.mxu0 %v791_v3  ;;  %v803_v11 = vor.u32 %v858_v9, %v800_v10  ;;  %s854_s5 = sshll.u32 %s1108_s12, 5  ;;  %s856_s16 = sshll.u32 %s1108_s12, 9 }
  0x10   : > { %350 = vmatpush.bf16.msra.mxu1 %v795_v7  ;;  %379 = vmatpush.bf16.msra.mxu2 %v799_v8  ;;  %s225_s8 = scalar_lea.vmem %s1099_s0, %s854_s5  ;;  %s235_s11 = scalar_lea.vmem %s1100_s1, %s854_s5 }
  0x11   : > { %408 = vmatpush.bf16.msra.mxu3 %v803_v11  ;;  %v861_v12 = vld [vmem:[%s225_s8] sm:$0xff]  ;;  %v862_v13 = vld [vmem:[%s225_s8 + $0x8] sm:$0xff]  ;;  %v863_v14 = vld [vmem:[%s225_s8 + $0x10] sm:$0xff]  ;;  %s1024_s19 = scalar_lea.vmem %s1102_s3, %s856_s16 }
  0x12   : > { %804 = vmatmul.msk.bf16.vlgmr.msra.gmra.mxu0 %vm301_vm0, %v861_v12  ;;  %v864_v15 = vld [vmem:[%s225_s8 + $0x18] sm:$0xff]  ;;  %v865_v16 = vld [vmem:[%s235_s11] sm:$0xff]  ;;  %v866_v17 = vld [vmem:[%s235_s11 + $0x8] sm:$0xff] }
  0x13   : > { %477 = vmatpush.bf16.msrb.mxu0 %v791_v3  ;;  %808 = vmatmul.msk.bf16.vlgmr.msra.gmra.mxu1 %vm301_vm0, %v861_v12  ;;  %v867_v18 = vld [vmem:[%s235_s11 + $0x10] sm:$0xff]  ;;  %v868_v19 = vld [vmem:[%s235_s11 + $0x18] sm:$0xff] }
  0x14   : > { %535 = vmatpush.bf16.msrb.mxu2 %v799_v8  ;;  %506 = vmatpush.bf16.msrb.mxu1 %v795_v7 }
  0x15   : > { %564 = vmatpush.bf16.msrb.mxu3 %v803_v11  ;;  %812 = vmatmul.msk.bf16.vlgmr.msra.gmra.mxu2 %vm301_vm0, %v861_v12 }
  0x16   : > { %816 = vmatmul.msk.bf16.vlgmr.msra.gmra.mxu3 %vm301_vm0, %v861_v12 }
  0x22   : > { %805 = vmatmul.msk.bf16.gmra.mxu0 %vm301_vm0, %v862_v13 }
  0x23   : > { %809 = vmatmul.msk.bf16.gmra.mxu1 %vm301_vm0, %v862_v13 }
  0x25   : > { %813 = vmatmul.msk.bf16.gmra.mxu2 %vm301_vm0, %v862_v13 }
  0x26   : > { %817 = vmatmul.msk.bf16.gmra.mxu3 %vm301_vm0, %v862_v13 }
  0x32   : > { %806 = vmatmul.msk.bf16.gmra.mxu0 %vm301_vm0, %v863_v14 }
  0x33   : > { %810 = vmatmul.msk.bf16.gmra.mxu1 %vm301_vm0, %v863_v14 }
  0x35   : > { %814 = vmatmul.msk.bf16.gmra.mxu2 %vm301_vm0, %v863_v14 }
  0x36   : > { %818 = vmatmul.msk.bf16.gmra.mxu3 %vm301_vm0, %v863_v14 }
  0x42   : > { %807 = vmatmul.msk.bf16.gmra.mxu0 %vm301_vm0, %v864_v15 }
  0x43   : > { %811 = vmatmul.msk.bf16.gmra.mxu1 %vm301_vm0, %v864_v15 }
  0x45   : > { %815 = vmatmul.msk.bf16.gmra.mxu2 %vm301_vm0, %v864_v15 }
  0x46   : > { %819 = vmatmul.msk.bf16.gmra.mxu3 %vm301_vm0, %v864_v15 }
  0x52   : > { %836 = vmatmul.msk.bf16.vlgmr.msrb.gmra.mxu0 %vm301_vm0, %v865_v16 }
  0x53   : > { %840 = vmatmul.msk.bf16.vlgmr.msrb.gmra.mxu1 %vm301_vm0, %v865_v16 }
  0x55   : > { %844 = vmatmul.msk.bf16.vlgmr.msrb.gmra.mxu2 %vm301_vm0, %v865_v16 }
  0x56   : > { %848 = vmatmul.msk.bf16.vlgmr.msrb.gmra.mxu3 %vm301_vm0, %v865_v16 }
  0x62   : > { %837 = vmatmul.msk.bf16.gmra.mxu0 %vm301_vm0, %v866_v17 }
  0x63   : > { %841 = vmatmul.msk.bf16.gmra.mxu1 %vm301_vm0, %v866_v17 }
  0x65   : > { %845 = vmatmul.msk.bf16.gmra.mxu2 %vm301_vm0, %v866_v17 }
  0x66   : > { %849 = vmatmul.msk.bf16.gmra.mxu3 %vm301_vm0, %v866_v17 }
  0x72   : > { %838 = vmatmul.msk.bf16.gmra.mxu0 %vm301_vm0, %v867_v18 }
  0x73   : > { %842 = vmatmul.msk.bf16.gmra.mxu1 %vm301_vm0, %v867_v18 }
  0x75   : > { %846 = vmatmul.msk.bf16.gmra.mxu2 %vm301_vm0, %v867_v18 }
  0x76   : > { %850 = vmatmul.msk.bf16.gmra.mxu3 %vm301_vm0, %v867_v18 }
  0x82   : > { %839 = vmatmul.msk.bf16.gmra.mxu0 %vm301_vm0, %v868_v19 }
  0x83   : > { %843 = vmatmul.msk.bf16.gmra.mxu1 %vm301_vm0, %v868_v19 }
  0x85   : > { %847 = vmatmul.msk.bf16.gmra.mxu2 %vm301_vm0, %v868_v19 }
  0x86   : > { %851 = vmatmul.msk.bf16.gmra.mxu3 %vm301_vm0, %v868_v19 }
  0x8f   : > { %v323_v20 = vpop.f32.mrf.mxu0 }
  0x90   : > { %v352_v21 = vpop.f32.mrf.mxu1  ;;  %586 = vst [vmem:[%s1024_s19] sm:$0xff] %v323_v20 }
  0x91   : > { %587 = vst [vmem:[%s1024_s19 + $0x8] sm:$0xff] %v352_v21 }
  0x97   : > { %v325_v24 = vpop.f32.mrf.mxu0 }
  0x98   : > { %v381_v22 = vpop.f32.mrf.mxu2  ;;  %v354_v25 = vpop.f32.mrf.mxu1  ;;  %594 = vst [vmem:[%s1024_s19 + $0x40] sm:$0xff] %v325_v24 }
  0x99   : > { %v410_v23 = vpop.f32.mrf.mxu3  ;;  %588 = vst [vmem:[%s1024_s19 + $0x10] sm:$0xff] %v381_v22 }
  0x9a   : > { %589 = vst [vmem:[%s1024_s19 + $0x18] sm:$0xff] %v410_v23 }
  0x9b   : > { %595 = vst [vmem:[%s1024_s19 + $0x48] sm:$0xff] %v354_v25 }
  0x9f   : > { %v328_v28 = vpop.f32.mrf.mxu0 }
  0xa0   : > { %v383_v26 = vpop.f32.mrf.mxu2  ;;  %v357_v29 = vpop.f32.mrf.mxu1  ;;  %602 = vst [vmem:[%s1024_s19 + $0x80] sm:$0xff] %v328_v28 }
  0xa1   : > { %v412_v27 = vpop.f32.mrf.mxu3  ;;  %596 = vst [vmem:[%s1024_s19 + $0x50] sm:$0xff] %v383_v26 }
  0xa2   : > { %597 = vst [vmem:[%s1024_s19 + $0x58] sm:$0xff] %v412_v27 }
  0xa3   : > { %603 = vst [vmem:[%s1024_s19 + $0x88] sm:$0xff] %v357_v29 }
  0xa7   : > { %v330_v32 = vpop.f32.mrf.mxu0 }
  0xa8   : > { %v386_v30 = vpop.f32.mrf.mxu2  ;;  %v359_v33 = vpop.f32.mrf.mxu1  ;;  %610 = vst [vmem:[%s1024_s19 + $0xc0] sm:$0xff] %v330_v32 }
  0xa9   : > { %v415_v31 = vpop.f32.mrf.mxu3  ;;  %604 = vst [vmem:[%s1024_s19 + $0x90] sm:$0xff] %v386_v30 }
  0xaa   : > { %605 = vst [vmem:[%s1024_s19 + $0x98] sm:$0xff] %v415_v31 }
  0xab   : > { %611 = vst [vmem:[%s1024_s19 + $0xc8] sm:$0xff] %v359_v33 }
  0xaf   : > { %v333_v36 = vpop.f32.mrf.mxu0 }
  0xb0   : > { %v388_v34 = vpop.f32.mrf.mxu2  ;;  %v362_v37 = vpop.f32.mrf.mxu1  ;;  %618 = vst [vmem:[%s1024_s19 + $0x100] sm:$0xff] %v333_v36 }
  0xb1   : > { %v417_v35 = vpop.f32.mrf.mxu3  ;;  %612 = vst [vmem:[%s1024_s19 + $0xd0] sm:$0xff] %v388_v34 }
  0xb2   : > { %613 = vst [vmem:[%s1024_s19 + $0xd8] sm:$0xff] %v417_v35 }
  0xb3   : > { %619 = vst [vmem:[%s1024_s19 + $0x108] sm:$0xff] %v362_v37 }
  0xb7   : > { %v335_v40 = vpop.f32.mrf.mxu0 }
  0xb8   : > { %v391_v38 = vpop.f32.mrf.mxu2  ;;  %v364_v41 = vpop.f32.mrf.mxu1  ;;  %626 = vst [vmem:[%s1024_s19 + $0x140] sm:$0xff] %v335_v40 }
  0xb9   : > { %v420_v39 = vpop.f32.mrf.mxu3  ;;  %620 = vst [vmem:[%s1024_s19 + $0x110] sm:$0xff] %v391_v38 }
  0xba   : > { %621 = vst [vmem:[%s1024_s19 + $0x118] sm:$0xff] %v420_v39 }
  0xbb   : > { %627 = vst [vmem:[%s1024_s19 + $0x148] sm:$0xff] %v364_v41 }
  0xbf   : > { %v338_v44 = vpop.f32.mrf.mxu0 }
  0xc0   : > { %v393_v42 = vpop.f32.mrf.mxu2  ;;  %v367_v45 = vpop.f32.mrf.mxu1  ;;  %634 = vst [vmem:[%s1024_s19 + $0x180] sm:$0xff] %v338_v44 }
  0xc1   : > { %v422_v43 = vpop.f32.mrf.mxu3  ;;  %628 = vst [vmem:[%s1024_s19 + $0x150] sm:$0xff] %v393_v42 }
  0xc2   : > { %629 = vst [vmem:[%s1024_s19 + $0x158] sm:$0xff] %v422_v43 }
  0xc3   : > { %635 = vst [vmem:[%s1024_s19 + $0x188] sm:$0xff] %v367_v45 }
  0xc7   : > { %v340_v48 = vpop.f32.mrf.mxu0 }
  0xc8   : > { %v396_v46 = vpop.f32.mrf.mxu2  ;;  %v369_v49 = vpop.f32.mrf.mxu1  ;;  %642 = vst [vmem:[%s1024_s19 + $0x1c0] sm:$0xff] %v340_v48 }
  0xc9   : > { %v425_v47 = vpop.f32.mrf.mxu3  ;;  %636 = vst [vmem:[%s1024_s19 + $0x190] sm:$0xff] %v396_v46 }
  0xca   : > { %637 = vst [vmem:[%s1024_s19 + $0x198] sm:$0xff] %v425_v47 }
  0xcb   : > { %643 = vst [vmem:[%s1024_s19 + $0x1c8] sm:$0xff] %v369_v49 }
  0xcf   : > { %v479_v52 = vpop.f32.mrf.mxu0 }
  0xd0   : > { %v398_v50 = vpop.f32.mrf.mxu2  ;;  %v508_v53 = vpop.f32.mrf.mxu1  ;;  %590 = vst [vmem:[%s1024_s19 + $0x20] sm:$0xff] %v479_v52 }
  0xd1   : > { %v427_v51 = vpop.f32.mrf.mxu3  ;;  %644 = vst [vmem:[%s1024_s19 + $0x1d0] sm:$0xff] %v398_v50 }
  0xd2   : > { %645 = vst [vmem:[%s1024_s19 + $0x1d8] sm:$0xff] %v427_v51 }
  0xd3   : > { %591 = vst [vmem:[%s1024_s19 + $0x28] sm:$0xff] %v508_v53 }
  0xd7   : > { %v481_v56 = vpop.f32.mrf.mxu0 }
  0xd8   : > { %v537_v54 = vpop.f32.mrf.mxu2  ;;  %v510_v57 = vpop.f32.mrf.mxu1  ;;  %598 = vst [vmem:[%s1024_s19 + $0x60] sm:$0xff] %v481_v56 }
  0xd9   : > { %v566_v55 = vpop.f32.mrf.mxu3  ;;  %592 = vst [vmem:[%s1024_s19 + $0x30] sm:$0xff] %v537_v54 }
  0xda   : > { %593 = vst [vmem:[%s1024_s19 + $0x38] sm:$0xff] %v566_v55 }
  0xdb   : > { %599 = vst [vmem:[%s1024_s19 + $0x68] sm:$0xff] %v510_v57 }
  0xdf   : > { %v484_v60 = vpop.f32.mrf.mxu0 }
  0xe0   : > { %v539_v58 = vpop.f32.mrf.mxu2  ;;  %v513_v61 = vpop.f32.mrf.mxu1  ;;  %606 = vst [vmem:[%s1024_s19 + $0xa0] sm:$0xff] %v484_v60 }
  0xe1   : > { %v568_v59 = vpop.f32.mrf.mxu3  ;;  %600 = vst [vmem:[%s1024_s19 + $0x70] sm:$0xff] %v539_v58 }
  0xe2   : > { %601 = vst [vmem:[%s1024_s19 + $0x78] sm:$0xff] %v568_v59 }
  0xe3   : > { %607 = vst [vmem:[%s1024_s19 + $0xa8] sm:$0xff] %v513_v61 }
  0xe7   : > { %v486_v0 = vpop.f32.mrf.mxu0 }
  0xe8   : > { %v542_v62 = vpop.f32.mrf.mxu2  ;;  %v515_v1 = vpop.f32.mrf.mxu1  ;;  %614 = vst [vmem:[%s1024_s19 + $0xe0] sm:$0xff] %v486_v0 }
  0xe9   : > { %v571_v63 = vpop.f32.mrf.mxu3  ;;  %608 = vst [vmem:[%s1024_s19 + $0xb0] sm:$0xff] %v542_v62 }
  0xea   : > { %609 = vst [vmem:[%s1024_s19 + $0xb8] sm:$0xff] %v571_v63 }
  0xeb   : > { %615 = vst [vmem:[%s1024_s19 + $0xe8] sm:$0xff] %v515_v1 }
  0xef   : > { %v489_v4 = vpop.f32.mrf.mxu0 }
  0xf0   : > { %v544_v2 = vpop.f32.mrf.mxu2  ;;  %v518_v5 = vpop.f32.mrf.mxu1  ;;  %622 = vst [vmem:[%s1024_s19 + $0x120] sm:$0xff] %v489_v4 }
  0xf1   : > { %v573_v3 = vpop.f32.mrf.mxu3  ;;  %616 = vst [vmem:[%s1024_s19 + $0xf0] sm:$0xff] %v544_v2 }
  0xf2   : > { %617 = vst [vmem:[%s1024_s19 + $0xf8] sm:$0xff] %v573_v3 }
  0xf3   : > { %623 = vst [vmem:[%s1024_s19 + $0x128] sm:$0xff] %v518_v5 }
  0xf7   : > { %v491_v8 = vpop.f32.mrf.mxu0 }
  0xf8   : > { %v547_v6 = vpop.f32.mrf.mxu2  ;;  %v520_v9 = vpop.f32.mrf.mxu1  ;;  %630 = vst [vmem:[%s1024_s19 + $0x160] sm:$0xff] %v491_v8 }
  0xf9   : > { %v576_v7 = vpop.f32.mrf.mxu3  ;;  %624 = vst [vmem:[%s1024_s19 + $0x130] sm:$0xff] %v547_v6 }
  0xfa   : > { %625 = vst [vmem:[%s1024_s19 + $0x138] sm:$0xff] %v576_v7 }
  0xfb   : > { %631 = vst [vmem:[%s1024_s19 + $0x168] sm:$0xff] %v520_v9 }
  0xff   : > { %v494_v12 = vpop.f32.mrf.mxu0 }
 0x100   : > { %v549_v10 = vpop.f32.mrf.mxu2  ;;  %v523_v13 = vpop.f32.mrf.mxu1  ;;  %638 = vst [vmem:[%s1024_s19 + $0x1a0] sm:$0xff] %v494_v12 }
 0x101   : > { %v578_v11 = vpop.f32.mrf.mxu3  ;;  %632 = vst [vmem:[%s1024_s19 + $0x170] sm:$0xff] %v549_v10 }
 0x102   : > { %633 = vst [vmem:[%s1024_s19 + $0x178] sm:$0xff] %v578_v11 }
 0x103   : > { %639 = vst [vmem:[%s1024_s19 + $0x1a8] sm:$0xff] %v523_v13 }
 0x107   : > { %v496_v16 = vpop.f32.mrf.mxu0 }
 0x108   : > { %v552_v14 = vpop.f32.mrf.mxu2  ;;  %v525_v17 = vpop.f32.mrf.mxu1  ;;  %646 = vst [vmem:[%s1024_s19 + $0x1e0] sm:$0xff] %v496_v16 }
 0x109   : > { %v581_v15 = vpop.f32.mrf.mxu3  ;;  %640 = vst [vmem:[%s1024_s19 + $0x1b0] sm:$0xff] %v552_v14 }
 0x10a   : > { %641 = vst [vmem:[%s1024_s19 + $0x1b8] sm:$0xff] %v581_v15 }
 0x10b   : > { %647 = vst [vmem:[%s1024_s19 + $0x1e8] sm:$0xff] %v525_v17 }
 0x110   : > { %v554_v18 = vpop.f32.mrf.mxu2 }
 0x111   : > { %v583_v19 = vpop.f32.mrf.mxu3  ;;  %648 = vst [vmem:[%s1024_s19 + $0x1f0] sm:$0xff] %v554_v18 }
 0x112   : > { %649 = vst [vmem:[%s1024_s19 + $0x1f8] sm:$0xff] %v583_v19 }
 0x113 PF: > { %s13_s14 = sadd.s32 1, %s915_s14   ;;  %s1103_s12 = smov %s911_s13 }
 0x114   : > { %p10_p5 = scmp.ge.s32.totalorder %s13_s14, 4   ;;  %s1104_s13 = smov %s1106_s15 }
 0x116   :  { %12 = sbr.rel (!%p10_p5) target bundleno = 2 (0x2), region = 65 }

// kernel: wase_forward.3
= control target key start
LH: loop header
LB: loop body
LE: loop exit
PB: predicated region body
PF: predicated region fallthrough
CT: control target
= control target key end

     0   :  { %s662_s9 = smov 0   ;;  %s664_s10 = smov 0   ;;  %s754_s0 = inlined_call_operand.vmem [shape: bf16[2,32,256], index: 0, kind: input, shape index: {}]   ;;  %s755_s1 = inlined_call_operand.vmem [shape: bf16[256,128], index: 1, kind: input, shape index: {}]   ;;  %s756_s2 = inlined_call_operand.vmem [shape: f32[2,32,128], index: 2, kind: output, shape index: {}]  }
   0x1   :  { %s666_s11 = smov 0  }
   0x2 LB: > { %s24_s12 = sadd.s32 1, %s641_s10  ;;  %p474_p0 = scmp.ge.s32.totalorder %s645_s11, 1  ;;  %s645_s11 = sphi %s666_s11, %s12_s11   ;;  %s641_s10 = sphi %s664_s10, %s758_s10   ;;  %s637_s9 = sphi %s662_s9, %s757_s9  }
   0x3   : > { %p26_p1 = scmp.ge.s32.totalorder %s24_s12, 2  ;;  %p134_p2 = scmp.lt.s32.totalorder %s645_s11, 3 }
   0x5   : > { %s760_s12 = smov (%p26_p1, %s24_s12), 0  ;;  %p135_p3 = pnand %p474_p0, %p134_p2 }
   0x6   : > { %p166_p4 = scmp.lt.s32.totalorder (!%p135_p3), %s637_s9, 1 }
   0x7   : > { %138 = sbr.rel (%p135_p3) target bundleno = 188 (0xbc), region = 28 }
   0xc   : > { %v574_v0 = vld [vmem:[%s755_s1 + $0x38] sm:$0xff]  ;;  %v573_v2 = vld [vmem:[%s755_s1 + $0x30] sm:$0xff]  ;;  %v572_v4 = vld [vmem:[%s755_s1 + $0x28] sm:$0xff]  ;;  %s762_s9 = smov (!%p166_p4, %s637_s9), 1 }
   0xd   : > { %v582_v1 = vld [vmem:[%s755_s1 + $0x78] sm:$0xff]  ;;  %338 = vmatpush.bf16.msra.mxu0 %v574_v0  ;;  %583 = vmatpush.bf16.msra.mxu2 %v574_v0  ;;  %v581_v3 = vld [vmem:[%s755_s1 + $0x70] sm:$0xff]  ;;  %v580_v5 = vld [vmem:[%s755_s1 + $0x68] sm:$0xff]  ;;  %s561_s13 = sshll.u32 %s762_s9, 5 }
   0xe   : > { %357 = vmatpush.bf16.msra.mxu1 %v582_v1  ;;  %591 = vmatpush.bf16.msra.mxu3 %v582_v1  ;;  %v571_v6 = vld [vmem:[%s755_s1 + $0x20] sm:$0xff]  ;;  %v570_v8 = vld [vmem:[%s755_s1 + $0x18] sm:$0xff]  ;;  %v569_v10 = vld [vmem:[%s755_s1 + $0x10] sm:$0xff]  ;;  %s174_s18 = scalar_lea.vmem %s754_s0, %s561_s13  ;;  %s184_s27 = scalar_lea.vmem %s756_s2, %s561_s13 }
   0xf   : > { %v579_v7 = vld [vmem:[%s755_s1 + $0x60] sm:$0xff]  ;;  %v578_v9 = vld [vmem:[%s755_s1 + $0x58] sm:$0xff]  ;;  %v577_v11 = vld [vmem:[%s755_s1 + $0x50] sm:$0xff] }
  0x10   : > { %v568_v12 = vld [vmem:[%s755_s1 + $0x8] sm:$0xff]  ;;  %v567_v14 = vld [vmem:[%s755_s1] sm:$0xff]  ;;  %v489_v18 = vld [vmem:[%s174_s18 + $0x10] sm:$0xf] }
  0x11   : > { %339 = vmatpush.bf16.msra.mxu0 %v573_v2  ;;  %584 = vmatpush.bf16.msra.mxu2 %v573_v2  ;;  %v576_v13 = vld [vmem:[%s755_s1 + $0x48] sm:$0xff]  ;;  %v575_v15 = vld [vmem:[%s755_s1 + $0x40] sm:$0xff]  ;;  %v566_v19 = vld [vmem:[%s174_s18 + $0x14] sm:$0xf0] }
  0x12   : > { %358 = vmatpush.bf16.msra.mxu1 %v581_v3  ;;  %592 = vmatpush.bf16.msra.mxu3 %v581_v3  ;;  %v481_v16 = vld [vmem:[%s174_s18] sm:$0xf]  ;;  %v564_v17 = vld [vmem:[%s174_s18 + $0x4] sm:$0xf0]  ;;  %v563_v20 = vld [vmem:[%s174_s18 + $0x4] sm:$0xf]  ;;  %v490_v25 = vor.u32 %v566_v19, %v489_v18 }
  0x13   : > { %v483_v21 = vld [vmem:[%s174_s18 + $0x8] sm:$0xf0]  ;;  %v565_v22 = vld [vmem:[%s174_s18 + $0x14] sm:$0xf]  ;;  %v491_v23 = vld [vmem:[%s174_s18 + $0x18] sm:$0xf0]  ;;  %v482_v24 = vor.u32 %v564_v17, %v481_v16 }
  0x14   : > { %v486_v26 = vor.u32 %v563_v20, %v483_v21  ;;  %v494_v27 = vor.u32 %v565_v22, %v491_v23 }
  0x15   : > { %340 = vmatpush.bf16.msra.mxu0 %v572_v4  ;;  %585 = vmatpush.bf16.msra.mxu2 %v572_v4 }
  0x16   : > { %359 = vmatpush.bf16.msra.mxu1 %v580_v5  ;;  %593 = vmatpush.bf16.msra.mxu3 %v580_v5 }
  0x19   : > { %341 = vmatpush.bf16.msra.mxu0 %v571_v6  ;;  %586 = vmatpush.bf16.msra.mxu2 %v571_v6 }
  0x1a   : > { %360 = vmatpush.bf16.msra.mxu1 %v579_v7  ;;  %594 = vmatpush.bf16.msra.mxu3 %v579_v7 }
  0x1d   : > { %342 = vmatpush.bf16.msra.mxu0 %v570_v8  ;;  %587 = vmatpush.bf16.msra.mxu2 %v570_v8 }
  0x1e   : > { %361 = vmatpush.bf16.msra.mxu1 %v578_v9  ;;  %595 = vmatpush.bf16.msra.mxu3 %v578_v9 }
  0x21   : > { %343 = vmatpush.bf16.msra.mxu0 %v569_v10  ;;  %588 = vmatpush.bf16.msra.mxu2 %v569_v10 }
  0x22   : > { %362 = vmatpush.bf16.msra.mxu1 %v577_v11  ;;  %596 = vmatpush.bf16.msra.mxu3 %v577_v11 }
  0x25   : > { %344 = vmatpush.bf16.msra.mxu0 %v568_v12  ;;  %589 = vmatpush.bf16.msra.mxu2 %v568_v12 }
  0x26   : > { %363 = vmatpush.bf16.msra.mxu1 %v576_v13  ;;  %597 = vmatpush.bf16.msra.mxu3 %v576_v13 }
  0x29   : > { %345 = vmatpush.bf16.msra.mxu0 %v567_v14  ;;  %590 = vmatpush.bf16.msra.mxu2 %v567_v14 }
  0x2a   : > { %364 = vmatpush.bf16.msra.mxu1 %v575_v15  ;;  %598 = vmatpush.bf16.msra.mxu3 %v575_v15 }
  0x2c   : > { %346 = vmatmul.bf16.vlgmr.msra.gmra.mxu0 %v482_v24  ;;  %351 = vmatmul.bf16.vlgmr.msra.gmra.mxu2 %v490_v25 }
  0x2d   : > { %365 = vmatmul.bf16.vlgmr.msra.gmra.mxu1 %v486_v26  ;;  %370 = vmatmul.bf16.vlgmr.msra.gmra.mxu3 %v494_v27 }
  0xa9   : > { %v347_v28 = vpop.f32.mrf.mxu0 }
  0xaa   : > { %v366_v29 = vpop.f32.mrf.mxu1 }
  0xab   : > { %v367_v30 = vadd.f32 %v366_v29, %v347_v28 }
  0xad   : > { %376 = vst [vmem:[%s184_s27] sm:$0xff] %v367_v30 }
  0xaf   : > { %v352_v31 = vpop.f32.mrf.mxu2 }
  0xb0   : > { %v371_v32 = vpop.f32.mrf.mxu3 }
  0xb1   : > { %v372_v33 = vadd.f32 %v371_v32, %v352_v31  ;;  %v349_v34 = vpop.f32.mrf.mxu0 }
  0xb2   : > { %v368_v35 = vpop.f32.mrf.mxu1 }
  0xb3   : > { %378 = vst [vmem:[%s184_s27 + $0x10] sm:$0xff] %v372_v33  ;;  %v369_v36 = vadd.f32 %v368_v35, %v349_v34 }
  0xb5   : > { %377 = vst [vmem:[%s184_s27 + $0x8] sm:$0xff] %v369_v36 }
  0xb7   : > { %v354_v37 = vpop.f32.mrf.mxu2 }
  0xb8   : > { %v373_v38 = vpop.f32.mrf.mxu3 }
  0xb9   : > { %v374_v39 = vadd.f32 %v373_v38, %v354_v37 }
  0xbb   : > { %379 = vst [vmem:[%s184_s27 + $0x18] sm:$0xff] %v374_v39 }
  0xbc PF: > { %s12_s11 = sadd.s32 1, %s645_s11   ;;  %s757_s9 = smov %s641_s10 }
  0xbd   : > { %p9_p5 = scmp.ge.s32.totalorder %s12_s11, 4   ;;  %s758_s10 = smov %s760_s12 }
  0xbf   :  { %11 = sbr.rel (!%p9_p5) target bundleno = 2 (0x2), region = 58 }

</bundles_post_ra>
